<compile_context>
chip_gen: v7x
topology: tpu7x:2x2x1
jax: 0.10.0
libtpu: 0.0.40
codegen_flags: <defaults>
</compile_context>

<pallas_src>
import jax
import jax.numpy as jnp
from jax.experimental import pallas as pl
from jax.experimental.pallas import tpu as pltpu

BN_EPS = 1e-5


def feature_block_kernel(x_ref, w_ref, p_ref, o_ref):
    # Linear (bias omitted: exactly cancelled by training-mode BN mean subtraction).
    # bf16 operands on the MXU, f32 accumulation.
    h = jnp.dot(x_ref[...], w_ref[...], preferred_element_type=jnp.float32)

    # Two-pass batch stats in f32. Stats are per-feature and the batch axis is never tiled,
    # so lane tiling keeps them exact; two-pass avoids E[h^2]-E[h]^2 cancellation.
    inv_n = 1.0 / h.shape[0]
    mean = jnp.sum(h, axis=0, keepdims=True) * inv_n
    centered = h - mean
    var = jnp.sum(centered * centered, axis=0, keepdims=True) * inv_n
    inv_std = jax.lax.rsqrt(var + BN_EPS)

    # Folded BN affine: y = (h - mean) * (gamma * inv_std) + beta  (one mul + add per element).
    gamma = p_ref[0:1, :]
    beta = p_ref[1:2, :]
    o_ref[...] = (centered * (gamma * inv_std) + beta).astype(o_ref.dtype)

    # TODO(synk): PyTorch BatchNorm1d (training) also updates running_mean / running_var
    # (unbiased variance); those buffer updates are not emitted by this forward kernel.


def _tpu_generation():
    """Per-generation constants from device_kind; conservative (v7x-like) when unknown."""
    kind = ""
    try:
        kind = jax.devices()[0].device_kind.lower()
    except Exception:
        pass
    is_v7 = ("v7" in kind) or ("tpu7" in kind) or ("7x" in kind)
    known_legacy = (not is_v7) and any(t in kind for t in ("v2", "v3", "v4", "v5", "v6"))
    phys_vmem = (128 if known_legacy else 64) * 1024 * 1024
    # v5e/v6e have a single TensorCore; v7x (and v4/v5p megacore) shard a "parallel" grid
    # axis across 2 cores. Unknown -> assume 2 (an even grid is harmless on a 1-TC part).
    single_tc = any(t in kind for t in ("v5e", "v5 lite", "v5lite", "v6"))
    num_tc = 1 if single_tc else 2
    # Scoped-VMEM cap with headroom under physical: ~48 MiB on 64 MiB parts, 96 MiB on 128 MiB parts.
    vmem_limit = 48 * 1024 * 1024 if phys_vmem <= 64 * 1024 * 1024 else 96 * 1024 * 1024
    return vmem_limit, num_tc


def _pick_tile_n(n, d_in, low_dim, out_bytes, vmem_budget, num_tc):
    """Largest multiple-of-128 divisor of low_dim whose per-tile working set fits the VMEM
    budget, keeping the grid step count a multiple of the TensorCore count."""
    candidates = [t for t in range(128, low_dim + 1, 128) if low_dim % t == 0]

    def working_set(t):
        return (2 * n * t * out_bytes      # output double-buffer
                + 2 * n * t * 4            # f32 h / centered temporaries
                + 2 * d_in * t * 2         # bf16 weight tile double-buffer
                + 2 * n * d_in * 2         # resident bf16 x (double-buffered by the pipeliner)
                + 2 * 2 * t * 4)           # packed gamma/beta tile

    for t in sorted(candidates, reverse=True):
        if (low_dim // t) % num_tc == 0 and working_set(t) <= vmem_budget:
            return t
    for t in sorted(candidates, reverse=True):          # fall back: ignore core-evenness
        if working_set(t) <= vmem_budget:
            return t
    return candidates[0]
    # TODO(synk): very large N (batch block no longer VMEM-resident) needs a two-phase
    # batch-tiled stats pass; this single-pass path assumes the whole batch fits.


def feature_block(x, w_t, gamma, beta, *, tile_n=None, out_dtype=jnp.float32):
    """x: (N, input_dim) f32; w_t: (input_dim, low_dim); gamma/beta: (1, low_dim) f32."""
    n, d_in = x.shape
    low_dim = w_t.shape[1]
    assert low_dim % 128 == 0, "low_dim must be a multiple of 128 (lane-dense output tiles)"

    vmem_limit, num_tc = _tpu_generation()
    out_bytes = jnp.dtype(out_dtype).itemsize
    if tile_n is None:
        tile_n = _pick_tile_n(n, d_in, low_dim, out_bytes, (3 * vmem_limit) // 4, num_tc)
    assert low_dim % tile_n == 0 and tile_n % 128 == 0

    # bf16 matmul operands (halves their HBM->VMEM bytes, full-rate MXU); BN math stays f32.
    x_bf = x.astype(jnp.bfloat16)
    w_bf = w_t.astype(jnp.bfloat16)
    params = jnp.concatenate([gamma, beta], axis=0).astype(jnp.float32)  # (2, low_dim)

    grid = (low_dim // tile_n,)
    bytes_accessed = (n * d_in * 2 + d_in * low_dim * 2 + 2 * low_dim * 4
                      + n * low_dim * out_bytes)

    return pl.pallas_call(
        feature_block_kernel,
        out_shape=jax.ShapeDtypeStruct((n, low_dim), out_dtype),
        grid=grid,
        in_specs=[
            # x stays resident across the lane-tile grid (constant block index -> no re-DMA).
            # NOTE: pipeline_mode=pl.Buffered(1) here would reclaim its second buffer
            # (N*d_in*2 bytes); omitted for portability — it is free headroom only.
            pl.BlockSpec((n, d_in), lambda j: (0, 0)),
            pl.BlockSpec((d_in, tile_n), lambda j: (0, j)),
            pl.BlockSpec((2, tile_n), lambda j: (0, j)),
        ],
        out_specs=pl.BlockSpec((n, tile_n), lambda j: (0, j)),
        compiler_params=pltpu.CompilerParams(
            dimension_semantics=("parallel",),   # megacore / v7x 2-TC sharding of lane tiles
            vmem_limit_bytes=vmem_limit,
        ),
        cost_estimate=pl.CostEstimate(
            flops=2 * n * d_in * low_dim,
            transcendentals=low_dim,             # one rsqrt per output feature
            bytes_accessed=bytes_accessed,
        ),
    )(x_bf, w_bf, params)


def init_params(key, input_dim, low_dim):
    k_w, k_g = jax.random.split(key)
    # Linear: kaiming_normal_(a=0, mode='fan_out') -> std = sqrt(2 / fan_out), fan_out = low_dim
    std_w = (2.0 / low_dim) ** 0.5
    w = jax.random.normal(k_w, (low_dim, input_dim), jnp.float32) * std_w  # torch layout (out, in)
    b = jnp.zeros((1, low_dim), jnp.float32)                               # init.zeros_
    # BatchNorm1d: weight ~ N(1.0, 0.01), bias zeros
    gamma = 1.0 + 0.01 * jax.random.normal(k_g, (1, low_dim), jnp.float32)
    beta = jnp.zeros((1, low_dim), jnp.float32)
    return w.T, b, gamma, beta  # pre-transpose weight to (input_dim, low_dim)


def feature_block_ref(x, w_t, b, gamma, beta):
    # Reference keeps the linear bias (it cancels under training-mode BN) and emulates the
    # kernel's precision: bf16-rounded matmul operands, f32 accumulation, f32 BN math.
    xh = x.astype(jnp.bfloat16).astype(jnp.float32)
    wh = w_t.astype(jnp.bfloat16).astype(jnp.float32)
    h = xh @ wh + b
    mean = jnp.mean(h, axis=0, keepdims=True)
    var = jnp.mean((h - mean) ** 2, axis=0, keepdims=True)
    return (h - mean) / jnp.sqrt(var + BN_EPS) * gamma + beta


if __name__ == "__main__":
    key = jax.random.PRNGKey(0)
    k_x, k_p = jax.random.split(key)

    batch, input_dim, low_dim = 8, 32, 256
    x = jax.random.normal(k_x, (batch, input_dim), jnp.float32)
    w_t, b, gamma, beta = init_params(k_p, input_dim, low_dim)
    ref = feature_block_ref(x, w_t, b, gamma, beta)

    # f32 output (tile_n auto-derived per generation).
    out = feature_block(x, w_t, gamma, beta)
    out = jax.block_until_ready(out)
    assert out.shape == (batch, low_dim)
    assert jnp.allclose(out, ref, atol=1e-4, rtol=1e-4)

    # bf16 output path (halved HBM writeback) — looser tolerance for the bf16 store rounding.
    out_bf = feature_block(x, w_t, gamma, beta, out_dtype=jnp.bfloat16)
    out_bf = jax.block_until_ready(out_bf)
    assert jnp.allclose(out_bf.astype(jnp.float32), ref, atol=5e-2, rtol=5e-2)

    # NOTE: at these demo shapes the kernel is pure launch/DMA overhead (~6% MXU rows used);
    # the tiling/VMEM logic only pays off at production N / low_dim.
    print("KERNEL_OK")
</pallas_src>

<mosaic_0001>
module attributes {stable_mosaic.version = 11 : i64} {
  func.func @feature_block_kernel(%arg0: i32, %arg1: memref<8x32xbf16, #tpu.memory_space<vmem>>, %arg2: memref<32x128xbf16, #tpu.memory_space<vmem>>, %arg3: memref<2x128xf32, #tpu.memory_space<vmem>>, %arg4: memref<8x128xf32, #tpu.memory_space<vmem>>) attributes {dimension_semantics = [#tpu.dimension_semantics<parallel>], iteration_bounds = array<i64: 2>, scalar_prefetch = 0 : i64, scratch_operands = 0 : i64, tpu.core_type = #tpu.core_type<tc>, window_params = [{pipeline_mode = #tpu.pipeline_mode<synchronous>, transform_indices = @transform_0, window_bounds = array<i64: 8, 32>}, {transform_indices = @transform_1, window_bounds = array<i64: 32, 128>}, {transform_indices = @transform_2, window_bounds = array<i64: 2, 128>}, {transform_indices = @transform_3, window_bounds = array<i64: 8, 128>}]} {
    %c0 = arith.constant 0 : index
    %c0_0 = arith.constant 0 : index
    %0 = vector.load %arg1[%c0, %c0_0] : memref<8x32xbf16, #tpu.memory_space<vmem>>, vector<8x32xbf16>
    %c0_1 = arith.constant 0 : index
    %c0_2 = arith.constant 0 : index
    %1 = vector.load %arg2[%c0_1, %c0_2] : memref<32x128xbf16, #tpu.memory_space<vmem>>, vector<32x128xbf16>
    %cst = arith.constant dense<0.000000e+00> : vector<8x128xf32>
    %2 = tpu.matmul %0, %1, %cst {dimension_numbers = #tpu.dot_dimension_numbers<[1], [0], [0], [1], [0, 0, 1, 1], [], []>} : vector<8x32xbf16>, vector<32x128xbf16>, vector<8x128xf32> -> vector<8x128xf32>
    %cst_3 = arith.constant dense<0.000000e+00> : vector<128xf32>
    %3 = vector.multi_reduction <add>, %2, %cst_3 [0] : vector<8x128xf32> to vector<128xf32>
    %4 = vector.shape_cast %3 : vector<128xf32> to vector<1x128xf32>
    %cst_4 = arith.constant 1.250000e-01 : f32
    %5 = vector.broadcast %cst_4 : f32 to vector<1x128xf32>
    %6 = arith.mulf %4, %5 : vector<1x128xf32>
    %7 = vector.broadcast %6 : vector<1x128xf32> to vector<8x128xf32>
    %8 = arith.subf %2, %7 : vector<8x128xf32>
    %9 = arith.mulf %8, %8 : vector<8x128xf32>
    %cst_5 = arith.constant dense<0.000000e+00> : vector<128xf32>
    %10 = vector.multi_reduction <add>, %9, %cst_5 [0] : vector<8x128xf32> to vector<128xf32>
    %11 = vector.shape_cast %10 : vector<128xf32> to vector<1x128xf32>
    %cst_6 = arith.constant 1.250000e-01 : f32
    %12 = vector.broadcast %cst_6 : f32 to vector<1x128xf32>
    %13 = arith.mulf %11, %12 : vector<1x128xf32>
    %cst_7 = arith.constant 9.99999974E-6 : f32
    %14 = vector.broadcast %cst_7 : f32 to vector<1x128xf32>
    %15 = arith.addf %13, %14 : vector<1x128xf32>
    %16 = math.rsqrt %15 : vector<1x128xf32>
    %c0_8 = arith.constant 0 : index
    %c0_9 = arith.constant 0 : index
    %17 = vector.load %arg3[%c0_8, %c0_9] : memref<2x128xf32, #tpu.memory_space<vmem>>, vector<1x128xf32>
    %c1 = arith.constant 1 : index
    %c0_10 = arith.constant 0 : index
    %18 = vector.load %arg3[%c1, %c0_10] : memref<2x128xf32, #tpu.memory_space<vmem>>, vector<1x128xf32>
    %19 = arith.mulf %17, %16 : vector<1x128xf32>
    %20 = vector.broadcast %19 : vector<1x128xf32> to vector<8x128xf32>
    %21 = arith.mulf %8, %20 : vector<8x128xf32>
    %22 = vector.broadcast %18 : vector<1x128xf32> to vector<8x128xf32>
    %23 = arith.addf %21, %22 : vector<8x128xf32>
    %c0_11 = arith.constant 0 : index
    %c0_12 = arith.constant 0 : index
    %24 = vector.load %arg4[%c0_11, %c0_12] : memref<8x128xf32, #tpu.memory_space<vmem>>, vector<8x128xf32>
    tpu.vector_store %arg4[%c0_11, %c0_12], %23 {strides = array<i32>} : memref<8x128xf32, #tpu.memory_space<vmem>>, vector<8x128xf32>,
    return
  }
  func.func @transform_0(%arg0: i32) -> (i32, i32) {
    %c0_i32 = arith.constant 0 : i32
    %c0_i32_0 = arith.constant 0 : i32
    %c0_i32_1 = arith.constant 0 : i32
    return %c0_i32, %c0_i32_0 : i32, i32
  }
  func.func @transform_1(%arg0: i32) -> (i32, i32) {
    %c0_i32 = arith.constant 0 : i32
    %c0_i32_0 = arith.constant 0 : i32
    return %c0_i32, %arg0 : i32, i32
  }
  func.func @transform_2(%arg0: i32) -> (i32, i32) {
    %c0_i32 = arith.constant 0 : i32
    %c0_i32_0 = arith.constant 0 : i32
    return %c0_i32, %arg0 : i32, i32
  }
  func.func @transform_3(%arg0: i32) -> (i32, i32) {
    %c0_i32 = arith.constant 0 : i32
    %c0_i32_0 = arith.constant 0 : i32
    return %c0_i32, %arg0 : i32, i32
  }
}

</mosaic_0001>

<bundles_post_ra>
// kernel: tpu_custom_call.1
= control target key start
LH: loop header
LB: loop body
LE: loop exit
PB: predicated region body
PF: predicated region fallthrough
CT: control target
= control target key end

     0   :  { %8 = vsyncpa [#allocation3], 0  ;;  %s876_s0 = inlined_call_operand.hbm [shape: bf16[8,32], index: 0, kind: input, shape index: {}]   ;;  %s877_s1 = inlined_call_operand.hbm [shape: bf16[32,256], index: 1, kind: input, shape index: {}]   ;;  %s878_s2 = inlined_call_operand.vmem [shape: f32[2,256], index: 2, kind: input, shape index: {}]   ;;  %s879_s3 = inlined_call_operand.hbm [shape: f32[8,256], index: 3, kind: output, shape index: {}]  }
   0x1   :  { %9 = vsyncpa [#allocation6], 0 }
   0x2   :  { %11 = vsyncpa [#allocation6 + $0x1], 0 }
   0x3   :  { %12 = vsyncpa [#allocation4], 0 }
   0x4   :  { %14 = vsyncpa [#allocation4 + $0x1], 0  ;;  %s674_s12 = smov 0   ;;  %s676_s13 = smov 0  }
   0x5   :  { %s678_s14 = smov 0   ;;  %s680_s15 = smov 0  }
   0x6 LB: > { %s695_s16 = sadd.s32 4294967295, %s644_s15   ;;  %s420_s17 = sadd.s32 4294967294, %s644_s15   ;;  %s644_s15 = sphi %s680_s15, %s904_s15   ;;  %s640_s14 = sphi %s678_s14, %s903_s14   ;;  %s636_s13 = sphi %s676_s13, %s902_s13   ;;  %s632_s12 = sphi %s674_s12, %s901_s12  }
   0x7   : > { %s699_s18 = sadd.s32 1, %s644_s15   ;;  %s48_s19 = sadd.s32 1, %s640_s14 }
   0x8   : > { %s45_s20 = ssub.s32 %s644_s15, %s699_s18  ;;  %p55_p0 = scmp.ne.s32.totalorder %s640_s14, %s636_s13 }
   0x9   : > { %p46_p1 = scmp.eq.s32.totalorder %s45_s20, 0  ;;  %p56_p2 = scmp.eq.s32.totalorder %s644_s15, 0 }
   0xa   : > { %p61_p3 = scmp.ne.s32.totalorder %s636_s13, %s632_s12  ;;  %p880_p4 = scmp.eq.s32.totalorder %s695_s16, 0 }
   0xb   : > { %s711_s21 = scalar_select %p46_p1, %s640_s14, %s48_s19  }
   0xc   : > { %p713_p5 = por %p56_p2, %p55_p0  ;;  %p719_p6 = por %p880_p4, %p61_p3 }
   0xd   : > { %p111_p7 = scmp.eq.s32.totalorder %s695_s16, 1  ;;  %p117_p8 = scmp.eq.s32.totalorder %s420_s17, 1 }
   0xe   : > { %s886_s23 = scalar_select %p719_p6, 1, 0 }
   0xf   : > { %p421_p9 = scmp.ge.s32.totalorder %s644_s15, 1  ;;  %p124_p10 = scmp.lt.s32.totalorder %s644_s15, 3 }
  0x10   : > { %p726_p11 = por %p111_p7, %p55_p0  ;;  %p730_p12 = por %p117_p8, %p61_p3 }
  0x11   : > { %p734_p13 = pnand %p421_p9, %p124_p10  ;;  %s646_s27 = smov [#allocation2]  }
  0x12   : > { %s887_s24 = scalar_select %p726_p11, 1, 0 }
  0x13   : > { %s888_s25 = scalar_select %p730_p12, 1, 0 }
  0x14   : > { %s889_s26 = scalar_select %p734_p13, 1, 0 }
  0x15   : > { %p458_p2 = pneg %p734_p13  ;;  %s137_s28 = sshll.u32 %s646_s27, 4  ;;  %s138_s28 = int_to_ptr.vmem [resolvable:$true] %s137_s28 }
  0x16   : > { %p471_p4 = scmp.lt.s32.totalorder %s644_s15, 2  ;;  %p890_p0 = scmp.eq.s32.totalorder %s695_s16, 0 }
  0x17   : > { %s148_s30 = sand.u32 1, %s640_s14   ;;  %s516_s8 = scalar_lea.hbm %s876_s0, 64 }
  0x18   : > { %p744_p7 = pnand %p458_p2, %p890_p0  ;;  %p751_p3 = pnand %p471_p4, %p713_p5 }
  0x19   : > { %s424_s5 = sshll.u32 %s148_s30, 4  ;;  %p517_p8 = scmp.ne.s32.totalorder %s876_s0, %s516_s8 }
  0x1a   : > { %s892_s4 = scalar_select %p751_p3, 1, 0 }
  0x1b   : > { %p518_p9 = pneg %p744_p7  ;;  %p523_p4 = scmp.lt.u32.totalorder %s516_s8, %s876_s0 }
  0x1d   : > { %p519_p10 = pnand %p518_p9, %p517_p8 }
  0x1f   : > { %p520_p2 = pneg %p519_p10 }
  0x21   : > { %p525_p5 = pnand %p523_p4, %p520_p2 }
  0x23   : > { %528 = shalt.err (!%p525_p5)
}
  0x24   : > { %s529_s19 = scalar_lea.vmem %s138_s28, 64  ;;  %p537_p11 = scmp.lt.s32.totalorder %s138_s28, %s138_s28 }
  0x25   : > { %p530_p0 = scmp.ne.s32.totalorder %s138_s28, %s529_s19  ;;  %p538_p6 = scmp.lt.s32.totalorder %s529_s19, %s529_s19 }
  0x27   : > { %p532_p1 = pnand %p530_p0, %p518_p9  ;;  %p539_p13 = por %p538_p6, %p537_p11 }
  0x29   : > { %p533_p12 = pneg %p532_p1 }
  0x2b   : > { %p540_p3 = pnand %p539_p13, %p533_p12 }
  0x2d   : > { %543 = shalt.err (!%p540_p3)
}
  0x2e   : > { %461 = dma.hbm_to_vmem [thread:$0]  (!%p744_p7), %s876_s0, 64, %s138_s28, [#allocation3]  }
  0x2f   : > { %s425_s27 = sshll.u32 %s644_s15, 6  ;;  %s152_s6 = scalar_lea.vmem [#allocation5], %s424_s5 }
  0x30   : > { %s158_s7 = sshll.u32 %s152_s6, 4  ;;  %s775_s10 = scalar_lea.hbm %s877_s1, %s425_s27  ;;  %s777_s7 = int_to_ptr.vmem [resolvable:$true] %s158_s7 }
  0x31   : > { %s779_s29 = scalar_lea.sflag [#allocation6], %s148_s30  ;;  %s544_s11 = scalar_lea.hbm %s775_s10, 256 }
  0x32   : > { %p545_p6 = scmp.ne.s32.totalorder %s775_s10, %s544_s11  ;;  %p893_p11 = scmp.ne.s32.totalorder %s892_s4, 0 }
  0x33   : > { %s549_s17 = scalar_lea.hbm %s877_s1, 512  ;;  %p550_p7 = scmp.lt.u32.totalorder %s775_s10, %s877_s1 }
  0x34   : > { %p546_p12 = pneg %p893_p11  ;;  %p551_p3 = scmp.lt.u32.totalorder %s549_s17, %s544_s11 }
  0x35   : > { %p553_p9 = scmp.lt.u32.totalorder %s544_s11, %s775_s10 }
  0x36   : > { %p547_p13 = pnand %p546_p12, %p545_p6  ;;  %p552_p8 = por %p551_p3, %p550_p7 }
  0x38   : > { %p548_p1 = pneg %p547_p13  ;;  %p554_p10 = por %p553_p9, %p552_p8 }
  0x3a   : > { %p555_p2 = pnand %p554_p10, %p548_p1 }
  0x3c   : > { %558 = shalt.err (!%p555_p2)
}
  0x3d   : > { %s559_s30 = scalar_lea.vmem %s777_s7, 256  ;;  %s647_s22 = smov [#allocation5]  }
  0x3e   : > { %p560_p4 = scmp.ne.s32.totalorder %s777_s7, %s559_s30  ;;  %s564_s27 = sshll.u32 %s647_s22, 4  ;;  %s565_s27 = int_to_ptr.vmem [resolvable:$false] %s564_s27 }
  0x3f   : > { %s566_s6 = scalar_lea.vmem %s565_s27, 512  ;;  %p567_p6 = scmp.lt.s32.totalorder %s777_s7, %s565_s27 }
  0x40   : > { %p562_p5 = pnand %p560_p4, %p546_p12  ;;  %p568_p13 = scmp.lt.s32.totalorder %s566_s6, %s559_s30 }
  0x42   : > { %p563_p0 = pneg %p562_p5  ;;  %p569_p7 = por %p568_p13, %p567_p6 }
  0x44   : > { %p570_p3 = pnand %p569_p7, %p563_p0 }
  0x46   : > { %573 = shalt.err (!%p570_p3)
}
  0x47   : > { %s648_s8 = smov 128   ;;  %s649_s9 = smov 64  }
  0x48   : > { %s650_s11 = smov 4   ;;  %p894_p12 = scmp.ne.s32.totalorder %s889_s26, 0 }
  0x49   : > { %465 = dma.hbm_to_vmem [thread:$0]  (!%p893_p11), %s775_s10, 256, %s777_s7, %s779_s29, %s648_s8, %s649_s9, %s650_s11  }
  0x4a   : > { %177 = sbr.rel (%p894_p12) target bundleno = 374 (0x176), region = 32  ;;  %p895_p1 = scmp.eq.s32.totalorder (!%p894_p12), %s695_s16, 0 }
  0x51   : > { %619 = dma.done.wait (%p895_p1), [#allocation3], 64   ;;  %p896_p8 = pmov %p895_p1 }
  0x52   : > { %s814_s28 = sand.u32 1, %s636_s13   ;;  %p897_p9 = scmp.ne.s32.totalorder %s886_s23, 0 }
  0x53   : > { %621 = vsyncadd (%p896_p8), [#allocation3], 4294967232  ;;  %s428_s5 = sshll.u32 %s814_s28, 4  ;;  %s184_s17 = scalar_lea.sflag [#allocation6], %s814_s28 }
  0x54   : > { %s187_s19 = scalar_lea.vmem [#allocation5], %s428_s5 }
  0x55   : > { %623 = dma.done.wait (%p897_p9), %s184_s17, 256  }
  0x56   : > { %625 = vsyncadd (%p897_p9), %s184_s17, 4294967040  ;;  %v651_v0 = vmov 0.0   ;;  %vm652_vm0 = vmmov 0   ;;  %v512_v1 = vld [vmem:[%s187_s19] sm:$0xff]   ;;  %v513_v2 = vld [vmem:[%s187_s19 + $0x8] sm:$0xff]   ;;  %vm236_vm1 = vcmask 261120   ;;  %v301_v25 = vlaneseq }
  0x57   : > { %442 = vmatprep.subr.bf16.mxu0 %v651_v0  ;;  %446 = vmatprep.mubr.msk.bf16.mxu0 %vm652_vm0, %v651_v0  ;;  %v219_v3 = vld [vmem:[#allocation2] sm:$0xf]  ;;  %p214_p11 = scmp.lt.s32.totalorder %s695_s16, 1  ;;  %s429_s29 = sshll.u32 %s814_s28, 3 }
  0x58   : > { %443 = vmatpush3.bf16.msra.mxu0 %v512_v1  ;;  %v302_v26 = vshrl.u32 %v301_v25, 7  ;;  %s436_s20 = sshll.u32 %s695_s16, 7  ;;  %s213_s30 = scalar_lea.vmem [#allocation7], %s429_s29 }
  0x59   : > { %444 = vmatprep.subr.bf16.mxu0 %v651_v0  ;;  %s215_s23 = scalar_select %p214_p11, %s695_s16, 1 }
  0x5a   : > { %v303_v28 = vsub.s32 0, %v302_v26  ;;  %s326_s22 = sshll.u32 %s213_s30, 4  ;;  %s832_s8 = scalar_lea.hbm %s879_s3, %s436_s20  ;;  %s834_s22 = int_to_ptr.vmem [resolvable:$true] %s326_s22 }
  0x5b   : > { %s430_s26 = sshll.u32 %s215_s23, 1  ;;  %s313_s9 = scalar_lea.sflag [#allocation4], %s814_s28 }
  0x5c   : > { %445 = vmatpush3.bf16.msra.mxu0 %v513_v2  ;;  %s217_s10 = scalar_lea.vmem %s878_s2, %s430_s26  ;;  %s574_s11 = scalar_lea.vmem %s834_s22, 128 }
  0x5d   : > { %v298_v27 = vld [vmem:[%s217_s10] sm:$0x1]  ;;  %v434_v32 = vld [vmem:[%s217_s10 + $0x1] ss:$0 sm:$0xff]  ;;  %p575_p10 = scmp.ne.s32.totalorder %s834_s22, %s574_s11  ;;  %p898_p2 = scmp.ne.s32.totalorder %s887_s24, 0 }
  0x5e   : > { %s653_s16 = smov [#allocation7]  }
  0x5f   : > { %447 = vmatmul.mubr.msk.bf16.vlgmr.msra.gmra.mrb[0].mxu0 %vm236_vm1, %v219_v3  ;;  %p576_p4 = pnand %p575_p10, %p898_p2  ;;  %s578_s5 = sshll.u32 %s653_s16, 4  ;;  %s579_s5 = int_to_ptr.vmem [resolvable:$false] %s578_s5 }
  0x60   : > { %s580_s17 = scalar_lea.vmem %s579_s5, 256  ;;  %p581_p0 = scmp.lt.s32.totalorder %s834_s22, %s579_s5 }
  0x61   : > { %p577_p5 = pneg %p576_p4  ;;  %p582_p6 = scmp.lt.s32.totalorder %s580_s17, %s574_s11 }
  0x63   : > { %p583_p13 = por %p582_p6, %p581_p0 }
  0x65   : > { %p584_p7 = pnand %p583_p13, %p577_p5 }
 0x132   : > { %v274_v4 = vpop.f32.mrb[0].mxu0 }
 0x133   : > { %v280_v5 = vrot.slane %v274_v4, 4  ;;  %v448_v6 = vpop.f32.mrb[1].mxu0 }
 0x134   : > { %v277_v7 = vpop.f32.mrb[2].mxu0 }
 0x135   : > { %v281_v8 = vadd.f32 %v280_v5, %v274_v4  ;;  %v449_v9 = vpop.f32.mrb[3].mxu0 }
 0x137   : > { %v282_v10 = vrot.slane %v281_v8, 2 }
 0x139   : > { %v283_v11 = vadd.f32 %v282_v10, %v281_v8 }
 0x13b   : > { %v284_v12 = vrot.slane %v283_v11, 1 }
 0x13d   : > { %v285_v13 = vadd.f32 %v284_v12, %v283_v11 }
 0x13f   : > { %v286_v14 = vmul.f32 0.125, %v285_v13 }
 0x141   : > { %v287_v15 = vsub.f32 %v274_v4, %v286_v14 }
 0x143   : > { %v288_v16 = vmul.f32 %v287_v15, %v287_v15 }
 0x145   : > { %v289_v17 = vrot.slane %v288_v16, 4 }
 0x147   : > { %v290_v18 = vadd.f32 %v289_v17, %v288_v16 }
 0x149   : > { %v291_v19 = vrot.slane %v290_v18, 2 }
 0x14b   : > { %v292_v20 = vadd.f32 %v291_v19, %v290_v18 }
 0x14d   : > { %v293_v21 = vrot.slane %v292_v20, 1 }
 0x14f   : > { %v294_v22 = vadd.f32 %v293_v21, %v292_v20 }
 0x151   : > { %v295_v23 = vmul.f32 0.125, %v294_v22 }
 0x153   : > { %v296_v24 = vadd.f32 1e-05, %v295_v23 }
 0x155   : > { %514 = vrsqrt.f32 %v296_v24 }
 0x15f   : > { %v515_v29 = vpop.eup %514 }
 0x160   : > { %v300_v30 = vmul.f32 %v515_v29, %v298_v27 }
 0x162   : > { %v304_v31 = vrot.slane %v300_v30, %v303_v28 }
 0x164   : > { %v305_v33 = vmul.f32 %v304_v31, %v287_v15 }
 0x166   : > { %v310_v34 = vadd.f32 %v434_v32, %v305_v33 }
 0x168   : > { %311 = vst [vmem:[%s213_s30] sm:$0xff] %v310_v34 }
 0x169   : > { %587 = shalt.err (!%p584_p7)
}
 0x16a   : > { %s588_s28 = scalar_lea.hbm %s832_s8, 128  ;;  %s592_s26 = scalar_lea.hbm %s879_s3, 256 }
 0x16b   : > { %p589_p3 = scmp.ne.s32.totalorder %s832_s8, %s588_s28  ;;  %p593_p8 = scmp.lt.u32.totalorder %s832_s8, %s879_s3 }
 0x16c   : > { %p594_p9 = scmp.lt.u32.totalorder %s592_s26, %s588_s28  ;;  %p596_p10 = scmp.lt.u32.totalorder %s588_s28, %s832_s8 }
 0x16d   : > { %p590_p12 = pnand %p589_p3, %p898_p2 }
 0x16e   : > { %p595_p11 = por %p594_p9, %p593_p8 }
 0x16f   : > { %p591_p1 = pneg %p590_p12 }
 0x170   : > { %p597_p4 = por %p596_p10, %p595_p11 }
 0x172   : > { %p598_p5 = pnand %p597_p4, %p591_p1 }
 0x174   : > { %601 = shalt.err (!%p598_p5)
}
 0x175   : > { %456 = dma.vmem_to_hbm [thread:$0]  (%p898_p2), %s834_s22, 128, %s832_s8, %s313_s9  }
 0x176 PF: > { %s338_s10 = sand.u32 1, %s632_s12   ;;  %p899_p0 = scmp.ne.s32.totalorder %s888_s25, 0 }
 0x177   : > { %p900_p6 = scmp.ge.s32.totalorder %s644_s15, 2  ;;  %s339_s29 = scalar_lea.sflag [#allocation4], %s338_s10 }
 0x179   : > { %p467_p13 = pnand %p900_p6, %p899_p0 }
 0x17b   : > { %627 = dma.done.wait (!%p467_p13), %s339_s29, 128  }
 0x17c   : > { %629 = vsyncadd (!%p467_p13), %s339_s29, 4294967168  ;;  %p17_p7 = scmp.ge.s32.totalorder %s699_s18, 4   ;;  %s901_s12 = smov %s636_s13 }
 0x17d   : > { %s902_s13 = smov %s640_s14  ;;  %s903_s14 = smov %s711_s21 }
 0x17e   : > { %s904_s15 = smov %s699_s18  ;;  %19 = sbr.rel (!%p17_p7) target bundleno = 6 (0x6), region = 85 }
 0x185   :  { %344 = vsyncpa [#allocation3], 1 }
 0x186   :  { %346 = vsyncpa [#allocation3 + $0x1], 1 }
 0x187   :  { %347 = vsyncpa [#allocation6], 1 }
 0x188   :  { %349 = vsyncpa [#allocation6 + $0x1], 1 }
 0x189   :  { %350 = vsyncpa [#allocation4], 1 }
 0x18a   :  { %352 = vsyncpa [#allocation4 + $0x1], 1 }

</bundles_post_ra>
